<compile_context>
chip_gen: v7x
topology: tpu7x:2x2x1
jax: 0.10.0
libtpu: 0.0.40
codegen_flags: <defaults>
</compile_context>

<pallas_src>
import functools

import jax
import jax.numpy as jnp
from jax.experimental import pallas as pl
from jax.experimental.pallas import tpu as pltpu


# ----------------------------------------------------------------------------
# Per-generation sizing helpers
# ----------------------------------------------------------------------------
def _vmem_capacity_bytes():
    """Best-effort per-core VMEM capacity; conservative (v7x) fallback."""
    try:
        info = pltpu.get_tpu_info()
        for name in ("vmem_capacity_bytes", "vmem_size_bytes", "vmem_bytes"):
            v = getattr(info, name, None)
            if v:
                return int(v)
    except Exception:
        pass
    return 64 * 1024 * 1024


def _pick_batch_tile(B, per_batch_bytes, block_cap_bytes):
    """Largest divisor of B whose block fits the cap, keeping >= 2 grid steps
    when B >= 2 so a v7x chip can shard the batch axis over both TensorCores."""
    max_bt = max(1, block_cap_bytes // max(per_batch_bytes, 1))
    if B >= 2:
        max_bt = min(max_bt, B // 2)
    bt = 1
    for d in range(1, B + 1):
        if B % d == 0 and d <= max_bt:
            bt = d
    return bt


# ----------------------------------------------------------------------------
# Fused kernel: avg-pool + fc1 + ReLU + fc2 + sigmoid + broadcast multiply
# ----------------------------------------------------------------------------
def _channel_atten_kernel(x_ref, w1t_ref, w2_ref, o_ref, *, inv_hw):
    # x_ref:   (Bt, C, HW)  lane-dense activation slab (HW on the 128-lane axis)
    # w1t_ref: (C, r)       = torch fc1 weight (r, C), transposed
    # w2_ref:  (C, r)       = torch fc2 weight (C, r), as-is
    x = x_ref[...]                                                    # native dtype

    # Global average pool over H*W: f32 accumulation, no f32 copy of the block.
    pooled = jnp.sum(x, axis=2, dtype=jnp.float32) * inv_hw           # (Bt, C)

    # fc1 (no bias) + ReLU:  h[b, j] = sum_c pooled[b, c] * W1[j, c]
    w1t = w1t_ref[...].astype(jnp.float32)                            # (C, r)
    h = jnp.maximum(
        jnp.sum(pooled[:, :, None] * w1t[None, :, :], axis=1), 0.0)   # (Bt, r)

    # fc2 (no bias) + sigmoid: y[b, c] = sigmoid(sum_j W2[c, j] * h[b, j])
    w2 = w2_ref[...].astype(jnp.float32)                              # (C, r)
    y = jax.nn.sigmoid(
        jnp.sum(w2[None, :, :] * h[:, None, :], axis=2))              # (Bt, C)

    # Broadcast multiply over the lane axis in the NATIVE dtype; lane-dense store.
    o_ref[...] = x * y[:, :, None].astype(o_ref.dtype)


@jax.jit
def channel_atten(x_nchw, w1, w2):
    """ChannelAtten forward.

    x_nchw: (B, C, H, W)
    w1:     torch fc1 weight, shape (C // reduction, C)   (Linear(C, C//r), no bias)
    w2:     torch fc2 weight, shape (C, C // reduction)   (Linear(C//r, C), no bias)
    """
    B, C, H, W = x_nchw.shape
    HW = H * W
    r = w1.shape[0]

    x2 = x_nchw.reshape(B, C, HW)       # contiguous reshape: free, no transpose
    w1t = w1.T                          # (C, r)

    # --- per-generation block sizing (all static, happens at trace time) ----
    dtype_bytes = jnp.dtype(x_nchw.dtype).itemsize
    per_batch = C * HW * dtype_bytes
    vmem_cap = _vmem_capacity_bytes()
    buf_budget = vmem_cap // 2          # headroom for weights / compiler scratch
    block_cap = buf_budget // 4         # 2 double-buffered inputs + 2 outputs live
    bt = _pick_batch_tile(B, per_batch, block_cap)

    weight_bytes = 2 * C * r * jnp.dtype(w1.dtype).itemsize
    needed = 4 * bt * per_batch + 4 * weight_bytes + (2 << 20)
    vmem_limit = int(min(max(needed, 32 << 20), vmem_cap - (8 << 20)))

    kern = functools.partial(_channel_atten_kernel, inv_hw=1.0 / HW)
    out2 = pl.pallas_call(
        kern,
        out_shape=jax.ShapeDtypeStruct((B, C, HW), x_nchw.dtype),
        grid=(B // bt,),
        in_specs=[
            pl.BlockSpec((bt, C, HW), lambda b: (b, 0, 0)),
            pl.BlockSpec((C, r), lambda b: (0, 0)),
            pl.BlockSpec((C, r), lambda b: (0, 0)),
        ],
        out_specs=pl.BlockSpec((bt, C, HW), lambda b: (b, 0, 0)),
        compiler_params=pltpu.CompilerParams(
            dimension_semantics=("parallel",),
            vmem_limit_bytes=vmem_limit),
    )(x2, w1t, w2)
    return out2.reshape(B, C, H, W)


# ----------------------------------------------------------------------------
# Pure-JAX reference (mirrors the PyTorch module exactly)
# ----------------------------------------------------------------------------
def channel_atten_ref(x, w1, w2):
    pooled = jnp.mean(x, axis=(2, 3))                 # (B, C)
    h = jnp.maximum(pooled @ w1.T, 0.0)               # (B, C//r)
    y = jax.nn.sigmoid(h @ w2.T)                      # (B, C)
    return x * y[:, :, None, None]


if __name__ == "__main__":
    B, C, H, W = 2, 32, 16, 16         # reduction=16 -> C // 16 = 2
    reduction = 16
    r = C // reduction

    key = jax.random.PRNGKey(0)
    kx, k1, k2 = jax.random.split(key, 3)
    x = jax.random.normal(kx, (B, C, H, W), jnp.float32)
    w1 = 0.3 * jax.random.normal(k1, (r, C), jnp.float32)   # torch Linear(C, C//16).weight
    w2 = 0.3 * jax.random.normal(k2, (C, r), jnp.float32)   # torch Linear(C//16, C).weight

    out = channel_atten(x, w1, w2)
    out = jax.block_until_ready(out)

    ref = channel_atten_ref(x, w1, w2)
    assert out.shape == (B, C, H, W), out.shape
    assert bool(jnp.isfinite(out).all())
    assert bool(jnp.allclose(out, ref, rtol=1e-4, atol=1e-4)), \
        float(jnp.abs(out - ref).max())
    print("KERNEL_OK")
</pallas_src>

<mosaic_0001>
module attributes {stable_mosaic.version = 11 : i64} {
  func.func @_channel_atten_kernel(%arg0: i32, %arg1: memref<1x32x256xf32, #tpu.memory_space<vmem>>, %arg2: memref<32x2xf32, #tpu.memory_space<vmem>>, %arg3: memref<32x2xf32, #tpu.memory_space<vmem>>, %arg4: memref<1x32x256xf32, #tpu.memory_space<vmem>>) attributes {dimension_semantics = [#tpu.dimension_semantics<parallel>], iteration_bounds = array<i64: 2>, scalar_prefetch = 0 : i64, scratch_operands = 0 : i64, tpu.core_type = #tpu.core_type<tc>, window_params = [{transform_indices = @transform_0, window_bounds = array<i64: 1, 32, 256>}, {pipeline_mode = #tpu.pipeline_mode<synchronous>, transform_indices = @transform_1, window_bounds = array<i64: 32, 2>}, {pipeline_mode = #tpu.pipeline_mode<synchronous>, transform_indices = @transform_2, window_bounds = array<i64: 32, 2>}, {transform_indices = @transform_3, window_bounds = array<i64: 1, 32, 256>}]} {
    %c0 = arith.constant 0 : index
    %c0_0 = arith.constant 0 : index
    %c0_1 = arith.constant 0 : index
    %0 = vector.load %arg1[%c0, %c0_0, %c0_1] : memref<1x32x256xf32, #tpu.memory_space<vmem>>, vector<1x32x256xf32>
    %cst = arith.constant dense<0.000000e+00> : vector<1x32xf32>
    %1 = vector.multi_reduction <add>, %0, %cst [2] : vector<1x32x256xf32> to vector<1x32xf32>
    %cst_2 = arith.constant 3.906250e-03 : f32
    %2 = vector.broadcast %cst_2 : f32 to vector<1x32xf32>
    %3 = arith.mulf %1, %2 : vector<1x32xf32>
    %c0_3 = arith.constant 0 : index
    %c0_4 = arith.constant 0 : index
    %4 = vector.load %arg2[%c0_3, %c0_4] : memref<32x2xf32, #tpu.memory_space<vmem>>, vector<32x2xf32>
    %5 = vector.shape_cast %3 : vector<1x32xf32> to vector<1x32x1xf32>
    %6 = vector.shape_cast %4 : vector<32x2xf32> to vector<1x32x2xf32>
    %7 = vector.broadcast %5 : vector<1x32x1xf32> to vector<1x32x2xf32>
    %8 = arith.mulf %7, %6 : vector<1x32x2xf32>
    %cst_5 = arith.constant dense<0.000000e+00> : vector<1x2xf32>
    %9 = vector.multi_reduction <add>, %8, %cst_5 [1] : vector<1x32x2xf32> to vector<1x2xf32>
    %cst_6 = arith.constant 0.000000e+00 : f32
    %10 = vector.broadcast %cst_6 : f32 to vector<1x2xf32>
    %11 = arith.maximumf %9, %10 : vector<1x2xf32>
    %c0_7 = arith.constant 0 : index
    %c0_8 = arith.constant 0 : index
    %12 = vector.load %arg3[%c0_7, %c0_8] : memref<32x2xf32, #tpu.memory_space<vmem>>, vector<32x2xf32>
    %13 = vector.shape_cast %12 : vector<32x2xf32> to vector<1x32x2xf32>
    %14 = vector.shape_cast %11 : vector<1x2xf32> to vector<1x1x2xf32>
    %15 = vector.broadcast %14 : vector<1x1x2xf32> to vector<1x32x2xf32>
    %16 = arith.mulf %13, %15 : vector<1x32x2xf32>
    %cst_9 = arith.constant dense<0.000000e+00> : vector<1x32xf32>
    %17 = vector.multi_reduction <add>, %16, %cst_9 [2] : vector<1x32x2xf32> to vector<1x32xf32>
    %18 = arith.negf %17 : vector<1x32xf32>
    %19 = math.exp %18 : vector<1x32xf32>
    %cst_10 = arith.constant 1.000000e+00 : f32
    %20 = vector.broadcast %cst_10 : f32 to vector<1x32xf32>
    %21 = arith.addf %20, %19 : vector<1x32xf32>
    %22 = arith.divf %20, %21 : vector<1x32xf32>
    %23 = vector.shape_cast %22 : vector<1x32xf32> to vector<1x32x1xf32>
    %24 = vector.broadcast %23 : vector<1x32x1xf32> to vector<1x32x256xf32>
    %25 = arith.mulf %0, %24 : vector<1x32x256xf32>
    %c0_11 = arith.constant 0 : index
    %c0_12 = arith.constant 0 : index
    %c0_13 = arith.constant 0 : index
    %26 = vector.load %arg4[%c0_11, %c0_12, %c0_13] : memref<1x32x256xf32, #tpu.memory_space<vmem>>, vector<1x32x256xf32>
    tpu.vector_store %arg4[%c0_11, %c0_12, %c0_13], %25 {strides = array<i32>} : memref<1x32x256xf32, #tpu.memory_space<vmem>>, vector<1x32x256xf32>,
    return
  }
  func.func @transform_0(%arg0: i32) -> (i32, i32, i32) {
    %c0_i32 = arith.constant 0 : i32
    %c0_i32_0 = arith.constant 0 : i32
    %c0_i32_1 = arith.constant 0 : i32
    return %arg0, %c0_i32, %c0_i32_0 : i32, i32, i32
  }
  func.func @transform_1(%arg0: i32) -> (i32, i32) {
    %c0_i32 = arith.constant 0 : i32
    %c0_i32_0 = arith.constant 0 : i32
    %c0_i32_1 = arith.constant 0 : i32
    return %c0_i32, %c0_i32_0 : i32, i32
  }
  func.func @transform_2(%arg0: i32) -> (i32, i32) {
    %c0_i32 = arith.constant 0 : i32
    %c0_i32_0 = arith.constant 0 : i32
    %c0_i32_1 = arith.constant 0 : i32
    return %c0_i32, %c0_i32_0 : i32, i32
  }
  func.func @transform_3(%arg0: i32) -> (i32, i32, i32) {
    %c0_i32 = arith.constant 0 : i32
    %c0_i32_0 = arith.constant 0 : i32
    %c0_i32_1 = arith.constant 0 : i32
    return %arg0, %c0_i32, %c0_i32_0 : i32, i32, i32
  }
}

</mosaic_0001>

<bundles_post_ra>
// kernel: channel_atten.1
= control target key start
LH: loop header
LB: loop body
LE: loop exit
PB: predicated region body
PF: predicated region fallthrough
CT: control target
= control target key end

     0   :  { %s402_s12 = smov 0   ;;  %s490_s0 = inlined_call_operand.vmem [shape: f32[2,32,256], index: 0, kind: input, shape index: {}]   ;;  %s491_s1 = inlined_call_operand.vmem [shape: f32[32,2], index: 1, kind: input, shape index: {}]   ;;  %s492_s2 = inlined_call_operand.vmem [shape: f32[32,2], index: 2, kind: input, shape index: {}]   ;;  %s493_s3 = inlined_call_operand.vmem [shape: f32[2,32,256], index: 3, kind: output, shape index: {}]  }
   0x1 LB: > { %s333_s13 = sadd.s32 4294967295, %s380_s12   ;;  %p337_p0 = scmp.ge.s32.totalorder %s380_s12, 1  ;;  %s380_s12 = sphi %s402_s12, %s13_s12  }
   0x2   : > { %p137_p1 = scmp.lt.s32.totalorder %s380_s12, 3 }
   0x4   : > { %p138_p2 = pnand %p337_p0, %p137_p1 }
   0x5   : > { %p161_p3 = scmp.lt.s32.totalorder (!%p138_p2), %s333_s13, 1  ;;  %v195_v15 = vld [vmem:[%s491_s1] sm:$0xff] (!%p138_p2)  ;;  %v197_v17 = vld [vmem:[%s491_s1 + $0x10] sm:$0xff] (!%p138_p2)  ;;  %v196_v18 = vld [vmem:[%s491_s1 + $0x8] sm:$0xff] (!%p138_p2)  ;;  %vm203_vm0 = vcmask (!%p138_p2), 15360  }
   0x6   : > { %141 = sbr.rel (%p138_p2) target bundleno = 369 (0x171), region = 32  ;;  %v198_v22 = vld [vmem:[%s491_s1 + $0x18] sm:$0xff] (!%p138_p2)  ;;  %v219_v41 = vld [vmem:[%s492_s2 + $0x8] sm:$0xff] (!%p138_p2)  ;;  %v218_v42 = vld [vmem:[%s492_s2] sm:$0xff] (!%p138_p2) }
   0x7   : > { %v221_v44 = vld [vmem:[%s492_s2 + $0x18] sm:$0xff] (!%p138_p2)  ;;  %v220_v45 = vld [vmem:[%s492_s2 + $0x10] sm:$0xff] (!%p138_p2) }
   0xd   : > { %s495_s13 = smov (!%p161_p3, %s333_s13), 1 }
   0xe   : > { %s348_s14 = sshll.u32 %s495_s13, 6 }
   0xf   : > { %s165_s17 = scalar_lea.vmem %s490_s0, %s348_s14  ;;  %s170_s9 = scalar_lea.vmem %s493_s3, %s348_s14 }
  0x10   : > { %v418_v0 = vld [vmem:[%s165_s17] sm:$0xff]  ;;  %v420_v1 = vld [vmem:[%s165_s17 + $0x8] sm:$0xff]  ;;  %v428_v5 = vld [vmem:[%s165_s17 + $0x10] sm:$0xff] }
  0x11   : > { %v422_v2 = vld [vmem:[%s165_s17 + $0x20] sm:$0xff]  ;;  %v179_v3 = vadd.f32 %v420_v1, %v418_v0  ;;  %v426_v4 = vld [vmem:[%s165_s17 + $0x28] sm:$0xff]  ;;  %v430_v6 = vld [vmem:[%s165_s17 + $0x18] sm:$0xff] }
  0x12   : > { %v185_v7 = vadd.f32 %v426_v4, %v422_v2  ;;  %v434_v8 = vld [vmem:[%s165_s17 + $0x30] sm:$0xff]  ;;  %v436_v9 = vld [vmem:[%s165_s17 + $0x38] sm:$0xff]  ;;  %v182_v10 = vadd.f32 %v430_v6, %v428_v5 }
  0x13   : > { %180 = vadd.xlane.f32.xlu0 %v179_v3  ;;  %v188_v11 = vadd.f32 %v436_v9, %v434_v8 }
  0x14   : > { %186 = vadd.xlane.f32.xlu1 %v185_v7 }
  0x17   : > { %183 = vadd.xlane.f32.xlu0 %v182_v10 }
  0x18   : > { %189 = vadd.xlane.f32.xlu1 %v188_v11 }
  0xa0   : > { %v181_v12 = vpop.xlane.xlu0 %180 }
  0xa1   : > { %v191_v13 = vmul.f32 0.00390625, %v181_v12  ;;  %v187_v14 = vpop.xlane.xlu1 %186 }
  0xa2   : > { %v193_v16 = vmul.f32 0.00390625, %v187_v14 }
  0xa3   : > { %v199_v20 = vmul.f32 %v195_v15, %v191_v13 }
  0xa4   : > { %v184_v19 = vpop.xlane.xlu0 %183  ;;  %v201_v25 = vmul.f32 %v197_v17, %v193_v16 }
  0xa5   : > { %v192_v21 = vmul.f32 0.00390625, %v184_v19  ;;  %v190_v23 = vpop.xlane.xlu1 %189  ;;  %v204_v28 = vsel %vm203_vm0, %v199_v20, 0.0 }
  0xa6   : > { %v194_v24 = vmul.f32 0.00390625, %v190_v23  ;;  %v207_v31 = vsel %vm203_vm0, %v201_v25, 0.0 }
  0xa7   : > { %v200_v26 = vmul.f32 %v196_v18, %v192_v21 }
  0xa8   : > { %v202_v27 = vmul.f32 %v198_v22, %v194_v24 }
  0xa9   : > { %v205_v29 = vsel %vm203_vm0, %v200_v26, 0.0 }
  0xaa   : > { %v206_v30 = vadd.f32 %v205_v29, %v204_v28  ;;  %v209_v32 = vsel %vm203_vm0, %v202_v27, 0.0 }
  0xac   : > { %v208_v33 = vadd.f32 %v207_v31, %v206_v30 }
  0xae   : > { %v210_v34 = vadd.f32 %v209_v32, %v208_v33 }
  0xb0   : > { %v211_v35 = vrot.slane %v210_v34, 4 }
  0xb2   : > { %v212_v36 = vadd.f32 %v211_v35, %v210_v34 }
  0xb4   : > { %v213_v37 = vrot.slane %v212_v36, 2 }
  0xb6   : > { %v214_v38 = vadd.f32 %v213_v37, %v212_v36 }
  0xb8   : > { %v215_v39 = vrot.slane %v214_v38, 1 }
  0xba   : > { %v216_v40 = vadd.f32 %v215_v39, %v214_v38 }
  0xbc   : > { %v217_v43 = vmax.f32 %v216_v40, 0.0 }
  0xbe   : > { %v223_v46 = vmul.f32 %v219_v41, %v217_v43  ;;  %v222_v47 = vmul.f32 %v218_v42, %v217_v43  ;;  %v225_v50 = vmul.f32 %v221_v44, %v217_v43  ;;  %v224_v51 = vmul.f32 %v220_v45, %v217_v43 }
  0xc0   : > { %v229_v48 = vsel %vm203_vm0, %v223_v46, 0.0  ;;  %v226_v49 = vsel %vm203_vm0, %v222_v47, 0.0  ;;  %v235_v52 = vsel %vm203_vm0, %v225_v50, 0.0  ;;  %v232_v53 = vsel %vm203_vm0, %v224_v51, 0.0 }
  0xc1   : > { %230 = vadd.xlane.f32.xlu1 %v229_v48  ;;  %227 = vadd.xlane.f32.xlu0 %v226_v49 }
  0xc5   : > { %236 = vadd.xlane.f32.xlu1 %v235_v52  ;;  %233 = vadd.xlane.f32.xlu0 %v232_v53 }
 0x14e   : > { %v231_v54 = vpop.xlane.xlu1 %230  ;;  %v228_v55 = vpop.xlane.xlu0 %227 }
 0x14f   : > { %v343_v56 = vmul.f32 -1.442695, %v231_v54  ;;  %v342_v57 = vmul.f32 -1.442695, %v228_v55 }
 0x151   : > { %358 = vpow2.f32 %v343_v56 }
 0x152   : > { %360 = vpow2.f32 %v342_v57  ;;  %v237_v58 = vpop.xlane.xlu1 %236  ;;  %v234_v59 = vpop.xlane.xlu0 %233 }
 0x153   : > { %v345_v60 = vmul.f32 -1.442695, %v237_v58  ;;  %v344_v61 = vmul.f32 -1.442695, %v234_v59 }
 0x155   : > { %362 = vpow2.f32 %v345_v60 }
 0x156   : > { %364 = vpow2.f32 %v344_v61 }
 0x15b   : > { %v359_v62 = vpop.eup %358 }
 0x15c   : > { %v361_v63 = vpop.eup %360  ;;  %v251_v3 = vadd.f32 1.0, %v359_v62 }
 0x15d   : > { %v250_v7 = vadd.f32 1.0, %v361_v63 }
 0x15e   : > { %366 = vrcp.f32 %v251_v3 }
 0x15f   : > { %v363_v10 = vpop.eup %362  ;;  %368 = vrcp.f32 %v250_v7 }
 0x160   : > { %v365_v11 = vpop.eup %364  ;;  %v253_v12 = vadd.f32 1.0, %v363_v10 }
 0x161   : > { %v252_v13 = vadd.f32 1.0, %v365_v11 }
 0x162   : > { %370 = vrcp.f32 %v253_v12 }
 0x163   : > { %372 = vrcp.f32 %v252_v13 }
 0x168   : > { %v367_v14 = vpop.eup %366 }
 0x169   : > { %v369_v15 = vpop.eup %368  ;;  %v264_v16 = vmul.f32 %v367_v14, %v428_v5  ;;  %v265_v17 = vmul.f32 %v367_v14, %v430_v6 }
 0x16a   : > { %v262_v18 = vmul.f32 %v369_v15, %v418_v0  ;;  %v263_v19 = vmul.f32 %v369_v15, %v420_v1 }
 0x16b   : > { %272 = vst [vmem:[%s170_s9 + $0x10] sm:$0xff] %v264_v16  ;;  %273 = vst [vmem:[%s170_s9 + $0x18] sm:$0xff] %v265_v17 }
 0x16c   : > { %v371_v20 = vpop.eup %370  ;;  %270 = vst [vmem:[%s170_s9] sm:$0xff] %v262_v18  ;;  %271 = vst [vmem:[%s170_s9 + $0x8] sm:$0xff] %v263_v19 }
 0x16d   : > { %v373_v21 = vpop.eup %372  ;;  %v268_v22 = vmul.f32 %v371_v20, %v434_v8  ;;  %v269_v23 = vmul.f32 %v371_v20, %v436_v9 }
 0x16e   : > { %v266_v24 = vmul.f32 %v373_v21, %v422_v2  ;;  %v267_v5 = vmul.f32 %v373_v21, %v426_v4 }
 0x16f   : > { %276 = vst [vmem:[%s170_s9 + $0x30] sm:$0xff] %v268_v22  ;;  %277 = vst [vmem:[%s170_s9 + $0x38] sm:$0xff] %v269_v23 }
 0x170   : > { %274 = vst [vmem:[%s170_s9 + $0x20] sm:$0xff] %v266_v24  ;;  %275 = vst [vmem:[%s170_s9 + $0x28] sm:$0xff] %v267_v5 }
 0x171 PF: > { %s13_s12 = sadd.s32 1, %s380_s12  }
 0x172   : > { %p10_p4 = scmp.ge.s32.totalorder %s13_s12, 4  }
 0x174   :  { %12 = sbr.rel (!%p10_p4) target bundleno = 1 (0x1), region = 62 }

</bundles_post_ra>
